<compile_context>
chip_gen: v7x
topology: tpu7x:2x2x1
jax: 0.10.0
libtpu: 0.0.40
codegen_flags: <defaults>
</compile_context>

<pallas_src>
import functools

import jax
import jax.numpy as jnp
from jax.experimental import pallas as pl
from jax.experimental.pallas import tpu as pltpu


def _eac_kernel(x_ref, kt_ref, va_ref, wq_ref, bq_ref, g_ref, o_ref, *, c_out):
    # x_ref : (C, TILE_N) f32           kt_ref: (M, C)     bf16  (K^T, per-batch const)
    # va_ref: (C_aug, M)  bf16  (rows 0..C-1 = V, row C = ones, zero pad after)
    # wq_ref: (C, C) bf16               bq_ref: (C, 1) f32       g_ref: (1, 1) f32 SMEM
    x = x_ref[...]                                                          # (C, TILE_N) f32

    # ---- Q projection (bf16 MXU operands, f32 accumulate, f32 bias) -------
    q = jnp.dot(wq_ref[...], x.astype(jnp.bfloat16),
                preferred_element_type=jnp.float32) + bq_ref[...]           # (C, TILE_N)

    # ---- energy^T[m, n] = sum_c K[c, m] Q[c, n]  (canonical MXU form) -----
    eT = jnp.dot(kt_ref[...], q.astype(jnp.bfloat16),
                 preferred_element_type=jnp.float32)                        # (M, TILE_N)

    # ---- numerically stable softmax over M; exp in bf16 -------------------
    e_max = jnp.max(eT, axis=0, keepdims=True)                              # (1, TILE_N)
    p = jnp.exp((eT - e_max).astype(jnp.bfloat16))                          # (M, TILE_N) bf16

    # ---- fused V matmul + denominator via the ones row of V_aug -----------
    out_aug = jnp.dot(va_ref[...], p, preferred_element_type=jnp.float32)   # (C_aug, TILE_N)
    num = out_aug[0:c_out, :]                                               # (C, TILE_N)
    den = out_aug[c_out:c_out + 1, :]                                       # (1, TILE_N) = sum_m p
    out = num * pl.reciprocal(den, approx=True)                             # softmax-normalized

    # ---- gamma * out + residual (gamma is an SMEM scalar) ------------------
    o_ref[...] = (g_ref[0, 0] * out + x).astype(o_ref.dtype)


def _round_up(a, b):
    return ((a + b - 1) // b) * b


def eac_module(x, params, *, tile_n=256, vmem_limit_bytes=48 * 1024 * 1024):
    """x: (B, C, H, W) float32 (NCHW, like PyTorch). Returns (B, C, H, W).

    params = (wq, bq, wk, bk, wv, bv, gamma) with
      w*: (Cout, Cin) (PyTorch Conv2d 1x1 weight squeezed),
      b*: (Cout, 1), gamma: (1, 1).
    Defaults (tile_n=256, 48 MiB) are sized for v7x's 64 MiB VMEM; on v5e/v6e
    (128 MiB) raise tile_n to 512+ and vmem_limit_bytes toward ~96 MiB.
    """
    wq, bq, wk, bk, wv, bv, gamma = params
    B, C, H, W = x.shape
    Cout = wq.shape[0]
    assert Cout == C, "out.view(B, C, H, W) + residual require out_dim == in_dim"
    assert H % 2 == 0 and W % 2 == 0, "2x2/stride-2 max-pool needs even H, W"
    ph, pw = H // 2, W // 2
    N, M = H * W, ph * pw

    # 2x2 / stride-2 max pool (cheap preprocessing pass over x).
    pool = x.reshape(B, C, ph, 2, pw, 2).max(axis=(3, 5))                   # (B, C, ph, pw)
    p_flat = pool.reshape(B, C, M)                                          # (B, C, M)

    # Hoisted K / V projections over the small pooled context (plain XLA),
    # delivered to the kernel as bf16 per-batch constants in MXU-friendly
    # orientation: K^T (M, C) and V_aug (C_aug, M) with a ones row at index C.
    kt = (jnp.einsum('oc,bcm->bmo', wk, p_flat)
          + bk[:, 0][None, None, :]).astype(jnp.bfloat16)                   # (B, M, C)
    v = jnp.einsum('oc,bcm->bom', wv, p_flat) + bv[None]                    # (B, C, M) f32
    c_aug = _round_up(C + 1, 8)
    v_aug = jnp.concatenate(
        [v,
         jnp.ones((B, 1, M), v.dtype),
         jnp.zeros((B, c_aug - C - 1, M), v.dtype)], axis=1
    ).astype(jnp.bfloat16)                                                  # (B, c_aug, M)

    # Channel-first flattened layout (pure reshapes, no HBM transpose of x).
    x_flat = x.reshape(B, C, N)                                             # (B, C, N)

    # Tile the query axis on 128-multiples; pad N instead of falling back to
    # a full-image tile (padded query columns are computed then dropped).
    tn = max(128, (tile_n // 128) * 128)
    tn = min(tn, _round_up(N, 128))
    n_pad = _round_up(N, tn)
    if n_pad != N:
        x_flat = jnp.pad(x_flat, ((0, 0), (0, 0), (0, n_pad - N)))

    grid = (B, n_pad // tn)
    kernel = functools.partial(_eac_kernel, c_out=C)

    grid_spec = pltpu.PrefetchScalarGridSpec(
        num_scalar_prefetch=0,
        grid=grid,
        in_specs=[
            # x tile: lane-dense last dim (TILE_N), batch dim squeezed.
            pl.BlockSpec((None, C, tn), lambda b, n: (b, 0, n)),
            # K^T / V_aug: per-batch constants (constant index over the N axis).
            pl.BlockSpec((None, M, C), lambda b, n: (b, 0, 0)),
            pl.BlockSpec((None, c_aug, M), lambda b, n: (b, 0, 0)),
            pl.BlockSpec((Cout, C), lambda b, n: (0, 0)),                   # Wq (bf16)
            pl.BlockSpec((Cout, 1), lambda b, n: (0, 0)),                   # bq
            pl.BlockSpec(memory_space=pltpu.MemorySpace.SMEM),              # gamma scalar
        ],
        out_specs=pl.BlockSpec((None, Cout, tn), lambda b, n: (b, 0, n)),
    )

    out_flat = pl.pallas_call(
        kernel,
        out_shape=jax.ShapeDtypeStruct((B, Cout, n_pad), jnp.float32),
        grid_spec=grid_spec,
        compiler_params=pltpu.CompilerParams(
            # No cross-step state anymore -> both axes are safely parallel
            # (lets v7x's second TensorCore shard the N axis when B is small).
            dimension_semantics=("parallel", "parallel"),
            vmem_limit_bytes=vmem_limit_bytes,
        ),
    )(x_flat, kt, v_aug, wq.astype(jnp.bfloat16), bq, gamma)

    return out_flat[:, :, :N].reshape(B, Cout, H, W)


def eac_reference(x, params):
    """Pure-JAX reference mirroring the PyTorch forward (correctness check)."""
    wq, bq, wk, bk, wv, bv, gamma = params
    B, C, H, W = x.shape
    ph, pw = H // 2, W // 2
    pool = x.reshape(B, C, ph, 2, pw, 2).max(axis=(3, 5))
    xf = x.reshape(B, C, H * W)                                             # (B, C, N)
    pf = pool.reshape(B, C, ph * pw)                                        # (B, C, M)
    q = jnp.einsum('oc,bcn->bon', wq, xf) + bq[None]
    k = jnp.einsum('oc,bcm->bom', wk, pf) + bk[None]
    v = jnp.einsum('oc,bcm->bom', wv, pf) + bv[None]
    energy = jnp.einsum('bcn,bcm->bnm', q, k)
    attn = jax.nn.softmax(energy, axis=-1)
    out = jnp.einsum('bcm,bnm->bcn', v, attn)
    out = gamma[0, 0] * out + xf
    return out.reshape(B, C, H, W)


if __name__ == "__main__":
    B, C, H, W = 2, 4, 16, 16          # in_dim = out_dim = C
    key = jax.random.PRNGKey(0)
    k_x, k_wq, k_bq, k_wk, k_bk, k_wv, k_bv = jax.random.split(key, 7)

    x = jax.random.normal(k_x, (B, C, H, W), dtype=jnp.float32)

    # Conv2d(in, out, 1) weight is (out, in, 1, 1); store the squeezed (out, in).
    def conv_w(k):
        return 0.1 * jax.random.normal(k, (C, C), dtype=jnp.float32)

    wq, wk, wv = conv_w(k_wq), conv_w(k_wk), conv_w(k_wv)
    bq = 0.05 * jax.random.normal(k_bq, (C, 1), dtype=jnp.float32)
    bk = 0.05 * jax.random.normal(k_bk, (C, 1), dtype=jnp.float32)
    bv = 0.05 * jax.random.normal(k_bv, (C, 1), dtype=jnp.float32)
    # PyTorch inits gamma to 0 (output would trivially equal x); use a nonzero
    # deterministic value so the attention path is actually exercised.
    gamma = jnp.full((1, 1), 0.5, dtype=jnp.float32)

    params = (wq, bq, wk, bk, wv, bv, gamma)

    # tile_n=128 -> grid=(2, 2): exercises the multi-tile query path.
    out = eac_module(x, params, tile_n=128)
    out = jax.block_until_ready(out)

    ref = eac_reference(x, params)
    assert out.shape == (B, C, H, W)
    # bf16 MXU matmuls, bf16 exp and approx reciprocal loosen the tolerance
    # vs. the pure f32 reference.
    err = jnp.max(jnp.abs(out - ref))
    assert jnp.allclose(out, ref, rtol=2e-2, atol=2e-2), f"max abs err = {err}"

    print("KERNEL_OK")
</pallas_src>

<mosaic_0001>
module attributes {stable_mosaic.version = 11 : i64} {
  func.func @_eac_kernel(%arg0: i32, %arg1: i32, %arg2: memref<1x4x128xf32, #tpu.memory_space<vmem>>, %arg3: memref<1x64x4xbf16, #tpu.memory_space<vmem>>, %arg4: memref<1x8x64xbf16, #tpu.memory_space<vmem>>, %arg5: memref<4x4xbf16, #tpu.memory_space<vmem>>, %arg6: memref<4x1xf32, #tpu.memory_space<vmem>>, %arg7: memref<1x1xf32, #tpu.memory_space<smem>>, %arg8: memref<1x4x128xf32, #tpu.memory_space<vmem>>) attributes {dimension_semantics = [#tpu.dimension_semantics<parallel>, #tpu.dimension_semantics<parallel>], iteration_bounds = array<i64: 2, 2>, scalar_prefetch = 0 : i64, scratch_operands = 0 : i64, tpu.core_type = #tpu.core_type<tc>, window_params = [{transform_indices = @transform_0, window_bounds = array<i64: 1, 4, 128>}, {transform_indices = @transform_1, window_bounds = array<i64: 1, 64, 4>}, {transform_indices = @transform_2, window_bounds = array<i64: 1, 8, 64>}, {pipeline_mode = #tpu.pipeline_mode<synchronous>, transform_indices = @transform_3, window_bounds = array<i64: 4, 4>}, {pipeline_mode = #tpu.pipeline_mode<synchronous>, transform_indices = @transform_4, window_bounds = array<i64: 4, 1>}, {transform_indices = @transform_5, window_bounds = array<i64: 1, 1>}, {transform_indices = @transform_6, window_bounds = array<i64: 1, 4, 128>}]} {
    %c0 = arith.constant 0 : index
    %c0_0 = arith.constant 0 : index
    %c0_1 = arith.constant 0 : index
    %0 = vector.load %arg2[%c0, %c0_0, %c0_1] : memref<1x4x128xf32, #tpu.memory_space<vmem>>, vector<1x4x128xf32>
    %1 = vector.shape_cast %0 : vector<1x4x128xf32> to vector<4x128xf32>
    %c0_2 = arith.constant 0 : index
    %c0_3 = arith.constant 0 : index
    %2 = vector.load %arg5[%c0_2, %c0_3] : memref<4x4xbf16, #tpu.memory_space<vmem>>, vector<4x4xbf16>
    %3 = arith.truncf %1 : vector<4x128xf32> to vector<4x128xbf16>
    %cst = arith.constant dense<0.000000e+00> : vector<4x128xf32>
    %4 = tpu.matmul %2, %3, %cst {dimension_numbers = #tpu.dot_dimension_numbers<[1], [0], [0], [1], [0, 0, 1, 1], [], []>} : vector<4x4xbf16>, vector<4x128xbf16>, vector<4x128xf32> -> vector<4x128xf32>
    %c0_4 = arith.constant 0 : index
    %c0_5 = arith.constant 0 : index
    %5 = vector.load %arg6[%c0_4, %c0_5] : memref<4x1xf32, #tpu.memory_space<vmem>>, vector<4x1xf32>
    %6 = vector.broadcast %5 : vector<4x1xf32> to vector<4x128xf32>
    %7 = arith.addf %4, %6 : vector<4x128xf32>
    %c0_6 = arith.constant 0 : index
    %c0_7 = arith.constant 0 : index
    %c0_8 = arith.constant 0 : index
    %8 = vector.load %arg3[%c0_6, %c0_7, %c0_8] : memref<1x64x4xbf16, #tpu.memory_space<vmem>>, vector<1x64x4xbf16>
    %9 = vector.shape_cast %8 : vector<1x64x4xbf16> to vector<64x4xbf16>
    %10 = arith.truncf %7 : vector<4x128xf32> to vector<4x128xbf16>
    %cst_9 = arith.constant dense<0.000000e+00> : vector<64x128xf32>
    %11 = tpu.matmul %9, %10, %cst_9 {dimension_numbers = #tpu.dot_dimension_numbers<[1], [0], [0], [1], [0, 0, 1, 1], [], []>} : vector<64x4xbf16>, vector<4x128xbf16>, vector<64x128xf32> -> vector<64x128xf32>
    %cst_10 = arith.constant dense<0xFF800000> : vector<128xf32>
    %12 = vector.multi_reduction <maximumf>, %11, %cst_10 [0] : vector<64x128xf32> to vector<128xf32>
    %13 = vector.shape_cast %12 : vector<128xf32> to vector<1x128xf32>
    %14 = vector.broadcast %13 : vector<1x128xf32> to vector<64x128xf32>
    %15 = arith.subf %11, %14 : vector<64x128xf32>
    %16 = arith.truncf %15 : vector<64x128xf32> to vector<64x128xbf16>
    %17 = math.exp %16 : vector<64x128xbf16>
    %c0_11 = arith.constant 0 : index
    %c0_12 = arith.constant 0 : index
    %c0_13 = arith.constant 0 : index
    %18 = vector.load %arg4[%c0_11, %c0_12, %c0_13] : memref<1x8x64xbf16, #tpu.memory_space<vmem>>, vector<1x8x64xbf16>
    %19 = vector.shape_cast %18 : vector<1x8x64xbf16> to vector<8x64xbf16>
    %cst_14 = arith.constant dense<0.000000e+00> : vector<8x128xf32>
    %20 = tpu.matmul %19, %17, %cst_14 {dimension_numbers = #tpu.dot_dimension_numbers<[1], [0], [0], [1], [0, 0, 1, 1], [], []>} : vector<8x64xbf16>, vector<64x128xbf16>, vector<8x128xf32> -> vector<8x128xf32>
    %21 = vector.extract_strided_slice %20 {offsets = [0, 0], sizes = [4, 128], strides = [1, 1]} : vector<8x128xf32> to vector<4x128xf32>
    %22 = vector.extract_strided_slice %20 {offsets = [4, 0], sizes = [1, 128], strides = [1, 1]} : vector<8x128xf32> to vector<1x128xf32>
    %23 = tpu.reciprocal %22 {approx = true} : vector<1x128xf32> -> vector<1x128xf32>
    %24 = vector.broadcast %23 : vector<1x128xf32> to vector<4x128xf32>
    %25 = arith.mulf %21, %24 : vector<4x128xf32>
    %c0_15 = arith.constant 0 : index
    %c0_16 = arith.constant 0 : index
    %26 = memref.load %arg7[%c0_15, %c0_16] : memref<1x1xf32, #tpu.memory_space<smem>>
    %27 = vector.broadcast %26 : f32 to vector<4x128xf32>
    %28 = arith.mulf %27, %25 : vector<4x128xf32>
    %29 = arith.addf %28, %1 : vector<4x128xf32>
    %c0_17 = arith.constant 0 : index
    %c0_18 = arith.constant 0 : index
    %c0_19 = arith.constant 0 : index
    %30 = vector.load %arg8[%c0_17, %c0_18, %c0_19] : memref<1x4x128xf32, #tpu.memory_space<vmem>>, vector<1x4x128xf32>
    %31 = vector.shape_cast %30 : vector<1x4x128xf32> to vector<4x128xf32>
    %32 = vector.shape_cast %29 : vector<4x128xf32> to vector<1x4x128xf32>
    tpu.vector_store %arg8[%c0_17, %c0_18, %c0_19], %32 {strides = array<i32>} : memref<1x4x128xf32, #tpu.memory_space<vmem>>, vector<1x4x128xf32>,
    return
  }
  func.func @transform_0(%arg0: i32, %arg1: i32) -> (i32, i32, i32) {
    %c0_i32 = arith.constant 0 : i32
    %c0_i32_0 = arith.constant 0 : i32
    return %arg0, %c0_i32, %arg1 : i32, i32, i32
  }
  func.func @transform_1(%arg0: i32, %arg1: i32) -> (i32, i32, i32) {
    %c0_i32 = arith.constant 0 : i32
    %c0_i32_0 = arith.constant 0 : i32
    %c0_i32_1 = arith.constant 0 : i32
    return %arg0, %c0_i32, %c0_i32_0 : i32, i32, i32
  }
  func.func @transform_2(%arg0: i32, %arg1: i32) -> (i32, i32, i32) {
    %c0_i32 = arith.constant 0 : i32
    %c0_i32_0 = arith.constant 0 : i32
    %c0_i32_1 = arith.constant 0 : i32
    return %arg0, %c0_i32, %c0_i32_0 : i32, i32, i32
  }
  func.func @transform_3(%arg0: i32, %arg1: i32) -> (i32, i32) {
    %c0_i32 = arith.constant 0 : i32
    %c0_i32_0 = arith.constant 0 : i32
    %c0_i32_1 = arith.constant 0 : i32
    return %c0_i32, %c0_i32_0 : i32, i32
  }
  func.func @transform_4(%arg0: i32, %arg1: i32) -> (i32, i32) {
    %c0_i32 = arith.constant 0 : i32
    %c0_i32_0 = arith.constant 0 : i32
    %c0_i32_1 = arith.constant 0 : i32
    return %c0_i32, %c0_i32_0 : i32, i32
  }
  func.func @transform_5(%arg0: i32, %arg1: i32) -> (i32, i32) {
    %c0_i32 = arith.constant 0 : i32
    %c0_i32_0 = arith.constant 0 : i32
    %c0_i32_1 = arith.constant 0 : i32
    return %c0_i32, %c0_i32_0 : i32, i32
  }
  func.func @transform_6(%arg0: i32, %arg1: i32) -> (i32, i32, i32) {
    %c0_i32 = arith.constant 0 : i32
    %c0_i32_0 = arith.constant 0 : i32
    return %arg0, %c0_i32, %arg1 : i32, i32, i32
  }
}

</mosaic_0001>

<bundles_post_ra>
// kernel: tpu_custom_call.1
= control target key start
LH: loop header
LB: loop body
LE: loop exit
PB: predicated region body
PF: predicated region fallthrough
CT: control target
= control target key end

     0   :  { %s1162_s0 = inlined_call_operand.vmem [shape: f32[2,4,256], index: 0, kind: input, shape index: {}]   ;;  %s1163_s1 = inlined_call_operand.vmem [shape: bf16[2,64,4], index: 1, kind: input, shape index: {}]   ;;  %s1164_s2 = inlined_call_operand.vmem [shape: bf16[2,8,64], index: 2, kind: input, shape index: {}]   ;;  %s1165_s3 = inlined_call_operand.vmem [shape: bf16[4,4], index: 3, kind: input, shape index: {}]   ;;  %s1166_s4 = inlined_call_operand.vmem [shape: f32[4,1], index: 4, kind: input, shape index: {}]   ;;  %s1167_s5 = inlined_call_operand.<no memory space> [shape: f32[1,1], index: 5, kind: input, shape index: {}]   ;;  %s1168_s6 = inlined_call_operand.hbm [shape: f32[2,4,256], index: 6, kind: output, shape index: {}]  }
   0x1   :  { %1169 = sst [smem:[#allocation6_spill]] %s1166_s4 }
   0x2   :  { %11 = sst [smem:[#allocation2]] %s1167_s5 }
   0x3   :  { %12 = vsyncpa [#allocation4], 0 }
   0x4   :  { %14 = vsyncpa [#allocation4 + $0x1], 0  ;;  %s986_s23 = smov 0   ;;  %s988_s24 = smov 0  }
   0x5   :  { %s990_s25 = smov 0   ;;  %s992_s26 = smov 0  }
   0x6   :  { %s994_s27 = smov 0   ;;  %s996_s28 = smov 0  }
   0x7   :  { %s998_s29 = smov 0   ;;  %s1000_s30 = smov 0  }
   0x8 LB: > { %s691_s5 = sadd.s32 4294967295, %s942_s30   ;;  %s692_s7 = sadd.s32 4294967294, %s942_s30   ;;  %s942_s30 = sphi %s1000_s30, %s20_s30   ;;  %s938_s29 = sphi %s998_s29, %s1179_s29   ;;  %s934_s28 = sphi %s996_s28, %s1178_s28   ;;  %s930_s27 = sphi %s994_s27, %s1177_s27   ;;  %s926_s26 = sphi %s992_s26, %s1176_s26   ;;  %s922_s25 = sphi %s990_s25, %s1175_s25   ;;  %s918_s24 = sphi %s988_s24, %s1174_s24   ;;  %s914_s23 = sphi %s986_s23, %s1173_s23  }
   0x9   : > { %s29_s8 = sadd.s32 1, %s934_s28  ;;  %s32_s9 = sadd.s32 1, %s938_s29 }
   0xa   : > { %p30_p0 = scmp.ge.s32.totalorder %s29_s8, 2  ;;  %p194_p1 = scmp.ne.s32.totalorder %s922_s25, %s918_s24 }
   0xb   : > { %p195_p2 = scmp.eq.s32.totalorder %s691_s5, 3  ;;  %p200_p5 = scmp.ne.s32.totalorder %s918_s24, %s914_s23 }
   0xc   : > { %s1181_s8 = smov (%p30_p0, %s29_s8), 0  ;;  %s1183_s9 = smov (!%p30_p0, %s32_s9), %s938_s29 }
   0xd   : > { %s180_s10 = ssub.s32 %s934_s28, %s1181_s8  ;;  %p1037_p3 = por %p195_p2, %p194_p1 }
   0xe   : > { %p34_p4 = scmp.ge.s32.totalorder %s1183_s9, 2  ;;  %p201_p6 = scmp.eq.s32.totalorder %s692_s7, 3 }
   0xf   : > { %p695_p7 = scmp.ge.s32.totalorder %s942_s30, 1  ;;  %p254_p9 = scmp.lt.s32.totalorder %s942_s30, 5 }
  0x10   : > { %s1185_s9 = smov (%p34_p4, %s1183_s9), 0  ;;  %p1046_p8 = por %p201_p6, %p200_p5 }
  0x11   : > { %s179_s13 = ssub.s32 %s938_s29, %s1185_s9  ;;  %s184_s14 = sadd.s32 1, %s922_s25 }
  0x12   : > { %s181_s15 = sor.u32 %s180_s10, %s179_s13  ;;  %p255_p10 = pnand %p695_p7, %p254_p9 }
  0x13   : > { %p182_p11 = scmp.eq.s32.totalorder %s181_s15, 0  ;;  %p296_p12 = scmp.lt.s32.totalorder (!%p255_p10), %s930_s27, 1  ;;  %v944_v0 = vmov (!%p255_p10), 0.0   ;;  %vm945_vm0 = vmmov (!%p255_p10), 0   ;;  %v946_v2 = vmov (!%p255_p10), 0   ;;  %vm327_vm1 = vcmask (!%p255_p10), 1041408  }
  0x14   : > { %258 = sbr.rel (%p255_p10) target bundleno = 779 (0x30b), region = 44  ;;  %p298_p13 = scmp.lt.s32.totalorder (!%p255_p10), %s926_s26, 1  ;;  %730 = vmatprep.subr.bf16.mxu0 (!%p255_p10), %v944_v0  ;;  %732 = vmatprep.mubr.msk.bf16.mxu0 (!%p255_p10), %vm945_vm0, %v944_v0  ;;  %v315_v6 = vld [vmem:[%s1165_s3] sm:$0x3] (!%p255_p10)  ;;  %vm323_vm2 = vcmask (!%p255_p10), 31744   ;;  %vm518_vm3 = vcmask (!%p255_p10), 523264   ;;  %v563_v62 = vlaneseq (!%p255_p10) }
  0x15   : > { %s1055_s16 = scalar_select %p182_p11, %s922_s25, %s184_s14  }
  0x16   : > { %s1172_s4 = sld [smem:[#allocation6_spill]] (!%p255_p10)  ;;  %833 = vset.pattern.permute.xlu0 (!%p255_p10), %v946_v2  ;;  %s293_s7 = sand.u32 (!%p255_p10), 1, %s918_s24  }
  0x17   : > { %s696_s10 = sshll.u32 (!%p255_p10), %s293_s7, 2 }
  0x18   : > { %s295_s17 = scalar_lea.vmem (!%p255_p10), [#allocation3], %s696_s10 }
  0x1b   : > { %s1066_s19 = scalar_select %p296_p12, %s930_s27, 1 }
  0x1c   : > { %v317_v1 = vld [vmem:[%s1172_s4] sm:$0xf]  ;;  %s299_s20 = scalar_select %p298_p13, %s926_s26, 1 }
  0x1d   : > { %320 = vperm.xlu0 %833, %v317_v1   ;;  %s697_s21 = sshll.u32 %s1066_s19, 1  ;;  %s717_s22 = sshll.u32 %s1066_s19, 5 }
  0x1e   : > { %s301_s5 = sadd.s32 %s697_s21, %s299_s20  ;;  %s308_s13 = scalar_lea.vmem %s1163_s1, %s717_s22 }
  0x1f   : > { %s698_s14 = sshll.u32 %s301_s5, 2  ;;  %v834_v7 = vld [vmem:[%s308_s13] sm:$0xff]   ;;  %v835_v16 = vld [vmem:[%s308_s13 + $0x8] sm:$0xff]   ;;  %v836_v17 = vld [vmem:[%s308_s13 + $0x10] sm:$0xff]   ;;  %s701_s4 = sshll.u32 %s1066_s19, 2 }
  0x20   : > { %s303_s18 = scalar_lea.vmem %s1162_s0, %s698_s14  ;;  %738 = vmatprep.mubr.msk.bf16.mxu1 %vm323_vm2, %v834_v7  ;;  %v837_v18 = vld [vmem:[%s308_s13 + $0x18] sm:$0xff]   ;;  %s312_s5 = scalar_lea.vmem %s1164_s2, %s701_s4 }
  0x21   : > { %v1077_v3 = vld [vmem:[%s303_s18] sm:$0xf]  ;;  %s568_s19 = sld [smem:[#allocation2]]  ;;  %s713_s13 = sshll.u32 %s930_s27, 1 }
  0x22   : > { %v316_v4 = vpack.c.bf16 %v1077_v3, %v1077_v3  ;;  %v517_v60 = vld [vmem:[%s312_s5] sm:$0xf]  ;;  %s585_s14 = sadd.s32 %s926_s26, %s713_s13  ;;  %s589_s18 = sshll.u32 %s295_s17, 4  ;;  %s1111_s18 = int_to_ptr.vmem [resolvable:$true] %s589_s18 }
  0x23   : > { %s714_s15 = sshll.u32 %s585_s14, 6  ;;  %s574_s26 = scalar_lea.sflag [#allocation4], %s293_s7 }
  0x24   : > { %v329_v5 = vsel %vm327_vm1, %v316_v4, 0  ;;  %v564_v4 = vshrl.u32 %v563_v62, 7  ;;  %s1109_s21 = scalar_lea.hbm %s1168_s6, %s714_s15  ;;  %s848_s27 = scalar_lea.vmem %s1111_s18, 64 }
  0x25   : > { %731 = vmatpush3.bf16.msra.mxu0 %v329_v5  ;;  %p849_p0 = scmp.ne.s32.totalorder %s1111_s18, %s848_s27  ;;  %s947_s22 = smov [#allocation3]  }
  0x26   : > { %746 = vmatprep.subr.bf16.mxu0 %v944_v0  ;;  %s852_s5 = sshll.u32 %s947_s22, 4  ;;  %s853_s5 = int_to_ptr.vmem [resolvable:$false] %s852_s5 }
  0x27   : > { %v569_v7 = vstv %s568_s19  ;;  %p850_p1 = pnand %p849_p0, %p1037_p3  ;;  %s854_s19 = scalar_lea.vmem %s853_s5, 128 }
  0x28   : > { %733 = vmatmul.mubr.msk.bf16.vlgmr.msra.gmra.mrb[0].mxu0 %vm323_vm2, %v315_v6  ;;  %p855_p4 = scmp.lt.s32.totalorder %s1111_s18, %s853_s5  ;;  %p856_p5 = scmp.lt.s32.totalorder %s854_s19, %s848_s27 }
  0x29   : > { %754 = vmatprep.mubr.msk.bf16.mxu0 %vm945_vm0, %v944_v0  ;;  %p851_p2 = pneg %p850_p1 }
  0x2a   : > { %p857_p6 = por %p856_p5, %p855_p4 }
  0x2c   : > { %p858_p7 = pnand %p857_p6, %p851_p2 }
  0x9c   : > { %v321_v8 = vpop.permute.xlu0 %320 }
  0xfb   : > { %v365_v9 = vpop.f32.mrb[0].mxu0 }
  0xfc   : > { %v366_v10 = vadd.f32 %v365_v9, %v321_v8  ;;  %v734_v11 = vpop.f32.mrb[1].mxu0 }
  0xfd   : > { %v368_v12 = vpop.f32.mrb[2].mxu0 }
  0xfe   : > { %v379_v13 = vpack.c.bf16 %v366_v10, %v366_v10  ;;  %v735_v14 = vpop.f32.mrb[3].mxu0 }
 0x100   : > { %758 = vmatprep.subr.msk.bf16.mxu1 %vm327_vm1, %v379_v13  ;;  %v413_v15 = vsel %vm327_vm1, %v379_v13, 0 }
 0x101   : > { %737 = vmatpush3.bf16.msra.mxu1 %v413_v15 }
 0x104   : > { %739 = vmatmul.mubr.msk.bf16.vlgmr.msra.gmra.mrb[0].mxu1 %vm323_vm2, %v835_v16 }
 0x105   : > { %742 = vmatprep.mubr.msk.bf16.mxu1 %vm323_vm2, %v836_v17 }
 0x10c   : > { %743 = vmatmul.mubr.msk.bf16.gmra.mrb[4].mxu1 %vm323_vm2, %v837_v18 }
 0x1d7   : > { %v740_v19 = vpop.f32.mrb[0].mxu1 }
 0x1d8   : > { %v449_v20 = vpop.f32.mrb[1].mxu1 }
 0x1d9   : > { %v741_v21 = vpop.f32.mrb[2].mxu1 }
 0x1da   : > { %v452_v22 = vpop.f32.mrb[3].mxu1 }
 0x1df   : > { %v744_v23 = vpop.f32.mrb[4].mxu1 }
 0x1e0   : > { %v482_v24 = vmax.f32 %v740_v19, %v744_v23  ;;  %v465_v25 = vpop.f32.mrb[5].mxu1 }
 0x1e1   : > { %v480_v26 = vmax.f32 %v449_v20, %v465_v25  ;;  %v745_v27 = vpop.f32.mrb[6].mxu1 }
 0x1e2   : > { %v483_v28 = vmax.f32 %v741_v21, %v745_v27  ;;  %v468_v29 = vpop.f32.mrb[7].mxu1 }
 0x1e3   : > { %v481_v30 = vmax.f32 %v452_v22, %v468_v29 }
 0x1e4   : > { %v485_v31 = vmax.f32 %v482_v24, %v483_v28 }
 0x1e5   : > { %v484_v32 = vmax.f32 %v480_v26, %v481_v30 }
 0x1e7   : > { %v486_v33 = vmax.f32 %v484_v32, %v485_v31 }
 0x1e9   : > { %v487_v34 = vrot.slane %v486_v33, 4 }
 0x1eb   : > { %v488_v35 = vmax.f32 %v486_v33, %v487_v34 }
 0x1ed   : > { %v489_v36 = vrot.slane %v488_v35, 2 }
 0x1ef   : > { %v490_v37 = vmax.f32 %v488_v35, %v489_v36 }
 0x1f1   : > { %v491_v38 = vrot.slane %v490_v37, 1 }
 0x1f3   : > { %v492_v39 = vmax.f32 %v490_v37, %v491_v38 }
 0x1f5   : > { %v493_v40 = vsub.f32 %v449_v20, %v492_v39  ;;  %v494_v41 = vsub.f32 %v452_v22, %v492_v39  ;;  %v495_v42 = vsub.f32 %v740_v19, %v492_v39  ;;  %v496_v43 = vsub.f32 %v741_v21, %v492_v39 }
 0x1f6   : > { %v497_v44 = vsub.f32 %v465_v25, %v492_v39  ;;  %v498_v45 = vsub.f32 %v468_v29, %v492_v39  ;;  %v499_v46 = vsub.f32 %v744_v23, %v492_v39  ;;  %v500_v47 = vsub.f32 %v745_v27, %v492_v39 }
 0x1f7   : > { %v501_v48 = vpack.c.bf16 %v494_v41, %v493_v40  ;;  %v502_v49 = vpack.c.bf16 %v496_v43, %v495_v42 }
 0x1f8   : > { %v503_v50 = vpack.c.bf16 %v498_v45, %v497_v44  ;;  %v504_v51 = vpack.c.bf16 %v500_v47, %v499_v46 }
 0x1f9   : > { %v506_v52 = vmul.bf16 1069105081, %v501_v48  ;;  %v509_v53 = vmul.bf16 1069105081, %v502_v49 }
 0x1fa   : > { %v512_v54 = vmul.bf16 1069105081, %v503_v50  ;;  %v515_v55 = vmul.bf16 1069105081, %v504_v51 }
 0x1fb   : > { %838 = vpow.bf16 %v506_v52 }
 0x1fc   : > { %840 = vpow.bf16 %v509_v53 }
 0x1fd   : > { %842 = vpow.bf16 %v512_v54 }
 0x1fe   : > { %844 = vpow.bf16 %v515_v55 }
 0x206   : > { %v839_v56 = vpop.eup %838 }
 0x207   : > { %747 = vmatpush3.bf16.msra.mxu0 %v839_v56  ;;  %v841_v57 = vpop.eup %840 }
 0x208   : > { %748 = vmatprep.subr.bf16.mxu0 %v944_v0  ;;  %v843_v58 = vpop.eup %842 }
 0x209   : > { %v845_v59 = vpop.eup %844 }
 0x20b   : > { %749 = vmatpush3.bf16.msra.mxu0 %v841_v57 }
 0x20c   : > { %750 = vmatprep.subr.bf16.mxu0 %v944_v0 }
 0x20f   : > { %751 = vmatpush3.bf16.msra.mxu0 %v843_v58 }
 0x210   : > { %752 = vmatprep.subr.bf16.mxu0 %v944_v0  ;;  %v565_v0 = vsub.s32 4, %v564_v4 }
 0x213   : > { %753 = vmatpush3.bf16.msra.mxu0 %v845_v59 }
 0x216   : > { %755 = vmatmul.mubr.msk.bf16.vlgmr.msra.gmra.mrb[4].mxu0 %vm518_vm3, %v517_v60 }
 0x2e9   : > { %v556_v61 = vpop.f32.mrb[4].mxu0 }
 0x2ea   : > { %846 = vrcp.f32 %v556_v61  ;;  %v756_v63 = vpop.f32.mrb[5].mxu0 }
 0x2eb   : > { %v559_v1 = vpop.f32.mrb[6].mxu0 }
 0x2ec   : > { %v757_v2 = vpop.f32.mrb[7].mxu0 }
 0x2f4   : > { %v847_v5 = vpop.eup %846 }
 0x2f5   : > { %v566_v6 = vrot.slane %v847_v5, %v565_v0 }
 0x2f7   : > { %v567_v8 = vmul.f32 %v566_v6, %v556_v61 }
 0x2f9   : > { %v570_v9 = vmul.f32 %v569_v7, %v567_v8 }
 0x2fb   : > { %v571_v10 = vadd.f32 %v570_v9, %v1077_v3 }
 0x2fd   : > { %572 = vst [vmem:[%s295_s17] sm:$0xf] %v571_v10 }
 0x2fe   : > { %861 = shalt.err (!%p858_p7)
}
 0x2ff   : > { %s862_s7 = scalar_lea.hbm %s1109_s21, 64  ;;  %s866_s14 = scalar_lea.hbm %s1168_s6, 256 }
 0x300   : > { %p863_p9 = scmp.ne.s32.totalorder %s1109_s21, %s862_s7  ;;  %p867_p12 = scmp.lt.u32.totalorder %s1109_s21, %s1168_s6 }
 0x301   : > { %p868_p13 = scmp.lt.u32.totalorder %s866_s14, %s862_s7  ;;  %p870_p1 = scmp.lt.u32.totalorder %s862_s7, %s1109_s21 }
 0x302   : > { %p864_p10 = pnand %p863_p9, %p1037_p3 }
 0x303   : > { %p869_p0 = por %p868_p13, %p867_p12 }
 0x304   : > { %p865_p11 = pneg %p864_p10 }
 0x305   : > { %p871_p2 = por %p870_p1, %p869_p0 }
 0x307   : > { %p872_p4 = pnand %p871_p2, %p865_p11 }
 0x309   : > { %875 = shalt.err (!%p872_p4)
}
 0x30a   : > { %759 = dma.vmem_to_hbm [thread:$0]  (%p1037_p3), %s1111_s18, 64, %s1109_s21, %s574_s26  }
 0x30b PF: > { %p765_p5 = scmp.ge.s32.totalorder %s942_s30, 2  ;;  %s601_s20 = sand.u32 1, %s914_s23  }
 0x30c   : > { %s602_s4 = scalar_lea.sflag [#allocation4], %s601_s20 }
 0x30d   : > { %p762_p6 = pnand %p765_p5, %p1046_p8 }
 0x30f   : > { %909 = dma.done.wait (!%p762_p6), %s602_s4, 64  }
 0x310   : > { %911 = vsyncadd (!%p762_p6), %s602_s4, 4294967232  ;;  %s20_s30 = sadd.s32 1, %s942_s30   ;;  %s1173_s23 = smov %s918_s24 }
 0x311   : > { %p17_p7 = scmp.ge.s32.totalorder %s20_s30, 6   ;;  %s1174_s24 = smov %s922_s25 }
 0x312   : > { %s1175_s25 = smov %s1055_s16  ;;  %s1176_s26 = smov %s934_s28 }
 0x313   : > { %s1177_s27 = smov %s938_s29  ;;  %s1178_s28 = smov %s1181_s8 }
 0x314   : > { %s1179_s29 = smov %s1185_s9  ;;  %19 = sbr.rel (!%p17_p7) target bundleno = 8 (0x8), region = 85 }
 0x31b   :  { %607 = vsyncpa [#allocation4], 1 }
 0x31c   :  { %609 = vsyncpa [#allocation4 + $0x1], 1 }

</bundles_post_ra>
